<compile_context>
chip_gen: v6e
topology: v6e:2x2x1
jax: 0.10.0
libtpu: 0.0.40
codegen_flags: <defaults>
</compile_context>

<pallas_src>
import jax
import jax.numpy as jnp
from jax.experimental import pallas as pl
from jax.experimental.pallas import tpu as pltpu


def _nrr_kernel(x_ref, w1_ref, b1_ref, wbig_ref, et_ref, lmadj_ref, rep_ref, out_ref):
    PKK = lmadj_ref.shape[-1]          # P * K * K (lane-dense output width)

    # --- MLP, normalization already folded into w1/b1; P timesteps per row ----
    x = x_ref[...]                                                      # (Tt, P*D)
    h = jnp.dot(x, w1_ref[...], preferred_element_type=jnp.float32)    # (Tt, P*H)
    h = jnp.maximum(h + b1_ref[...], 0.0)                              # ReLU

    # --- fused second layer: [o_tile | o] in one matmul ----------------------
    o_cat = jnp.dot(h, wbig_ref[...], preferred_element_type=jnp.float32)
    o_tile = o_cat[:, :PKK]            # (Tt, P*K*K): o[t, p, j] broadcast over i
    o = o_cat[:, PKK:]                 # (Tt, P*K)  : raw logits per packed timestep

    # --- factored, numerically stable logsumexp over the target-state axis ---
    # shared shift m per packed row is exact (it cancels below)
    m = jnp.max(o, axis=-1, keepdims=True)                              # (Tt, 1)
    oc = o - m                                                          # (Tt, P*K)
    s = jnp.dot(jnp.exp(oc), et_ref[...],
                preferred_element_type=jnp.float32)                     # (Tt, P*K)
    ls = jnp.log(s)                                                     # (Tt, P*K)

    # out[t, p*K*K + i*K + j] = lm_adj[i,j] + (o[t,p,j] - m) - ls[t, p*K + i]
    out_ref[...] = (lmadj_ref[...] + (o_tile - m)
                    - jnp.dot(ls, rep_ref[...], preferred_element_type=jnp.float32))


def neural_recurrent_regressor_forward(xu, mean, std, w1, b1, w2, logmat,
                                       *, pack=2, tile_t=4096):
    T, D = xu.shape
    H = w1.shape[1]
    K = w2.shape[1]
    assert w1.shape == (D, H) and w2.shape == (H, K) and logmat.shape == (K, K)

    f32 = jnp.float32
    P = max(int(pack), 1)

    # --- fold (x - mean) / std into the first Linear (exact algebra) ---------
    inv_std = 1.0 / std.astype(f32)
    w1f = w1.astype(f32)
    w1p = w1f * inv_std[:, None]
    b1p = (b1.astype(f32) - (mean.astype(f32) * inv_std) @ w1f).reshape(1, H)

    # --- logmat pieces for the factored logsumexp -----------------------------
    lm = logmat.astype(f32)
    lm_adj = lm - jnp.max(lm, axis=-1, keepdims=True)     # (K, K), <= 0
    et = jnp.exp(lm_adj).T                                # contraction over source j

    # --- small constant expansion matrices (exact 0/1) ------------------------
    eyeK = jnp.eye(K, dtype=f32)
    tile_mat = jnp.tile(eyeK, (1, K))                     # (K, K*K): o[j] -> lane i*K+j
    rep_mat = jnp.repeat(eyeK, K, axis=1)                 # (K, K*K): ls[i] -> lanes i*K..+K
    w2f = w2.astype(f32)

    # --- block-diagonal (timestep-packed) weights/constants -------------------
    eyeP = jnp.eye(P, dtype=f32)
    w1_blk = jnp.kron(eyeP, w1p)                              # (P*D, P*H)
    b1_rep = jnp.tile(b1p, (1, P))                            # (1,  P*H)
    w_big = jnp.concatenate([jnp.kron(eyeP, w2f @ tile_mat),  # (P*H, P*K*K)
                             jnp.kron(eyeP, w2f)], axis=1)    # (P*H, P*K) -> fused
    et_blk = jnp.kron(eyeP, et)                               # (P*K, P*K)
    rep_blk = jnp.kron(eyeP, rep_mat)                         # (P*K, P*K*K)
    lm_adj_rep = jnp.tile(lm_adj.reshape(1, K * K), (1, P))   # (1,  P*K*K)

    # --- tiling over packed rows ----------------------------------------------
    def _ru(x, m):
        return ((x + m - 1) // m) * m

    rows = -(-T // P)                                          # ceil(T / P)
    tile_rows = max(8, (max(tile_t, 8 * P) // P) // 8 * 8)     # multiple of 8
    tile_rows = min(tile_rows, _ru(rows, 8))
    if rows > 8:                     # keep >= 2 grid steps (v7x: 2 TensorCores)
        tile_rows = min(tile_rows, max(8, _ru(-(-rows // 2), 8)))
    rows_p = _ru(rows, tile_rows)
    Tp = rows_p * P

    xf = xu.astype(f32)
    if Tp != T:
        xf = jnp.pad(xf, ((0, Tp - T), (0, 0)))   # padded rows produce harmless garbage
    x_packed = xf.reshape(rows_p, P * D)

    PD, PH, PK, PKK = P * D, P * H, P * K, P * K * K
    grid = (rows_p // tile_rows,)

    out_flat = pl.pallas_call(
        _nrr_kernel,
        out_shape=jax.ShapeDtypeStruct((rows_p, PKK), f32),
        grid_spec=pltpu.PrefetchScalarGridSpec(
            num_scalar_prefetch=0,
            grid=grid,
            in_specs=[
                pl.BlockSpec((tile_rows, PD), lambda i: (i, 0)),  # packed xu tile
                pl.BlockSpec((PD, PH), lambda i: (0, 0)),         # blockdiag w1' (norm folded)
                pl.BlockSpec((1, PH), lambda i: (0, 0)),          # tiled b1'
                pl.BlockSpec((PH, PKK + PK), lambda i: (0, 0)),   # fused [w2@tile | w2] blockdiag
                pl.BlockSpec((PK, PK), lambda i: (0, 0)),         # blockdiag exp(lm_adj)^T
                pl.BlockSpec((1, PKK), lambda i: (0, 0)),         # tiled (logmat - rowmax)
                pl.BlockSpec((PK, PKK), lambda i: (0, 0)),        # blockdiag repeat matrix
            ],
            out_specs=pl.BlockSpec((tile_rows, PKK), lambda i: (i, 0)),
        ),
        compiler_params=pltpu.CompilerParams(
            dimension_semantics=("parallel",)),
    )(x_packed, w1_blk, b1_rep, w_big, et_blk, lm_adj_rep, rep_blk)

    # free reshape back to the module's (T, K, K) layout (row-major bytes unchanged)
    return out_flat.reshape(Tp, K * K)[:T].reshape(T, K, K)


def _reference_forward(xu, mean, std, w1, b1, w2, logmat):
    xn = (xu - mean) / std
    h = jnp.maximum(xn @ w1 + b1, 0.0)
    o = h @ w2
    logtrans = logmat[None, :, :] + o[:, None, :]
    return logtrans - jax.nn.logsumexp(logtrans, axis=-1, keepdims=True)


if __name__ == "__main__":
    # sizes = (D, H, K)  -> Linear(D,H) + ReLU + Linear(H,K, bias=False)
    D, H, K = 8, 32, 8

    key = jax.random.PRNGKey(0)
    k_x, k_w1, k_b1, k_w2, k_m, k_s, k_x2 = jax.random.split(key, 7)

    # deterministic synthetic parameters (PyTorch Linear-ish uniform init)
    w1 = jax.random.uniform(k_w1, (D, H), jnp.float32, -1.0 / D**0.5, 1.0 / D**0.5)
    b1 = jax.random.uniform(k_b1, (H,), jnp.float32, -1.0 / D**0.5, 1.0 / D**0.5)
    w2 = jax.random.uniform(k_w2, (H, K), jnp.float32, -1.0 / H**0.5, 1.0 / H**0.5)

    # norm dict: mean / std of the inputs
    mean = jax.random.normal(k_m, (D,), dtype=jnp.float32) * 0.1
    std = jax.random.uniform(k_s, (D,), jnp.float32, 0.5, 1.5)

    # logmat init as in __init__: log of a row-normalized all-ones matrix
    logmat = jnp.log(jnp.full((K, K), 1.0 / K, dtype=jnp.float32))

    # --- test 1: small T, single grid step, pack=2 (128-lane output) --------
    T = 16
    xu = jax.random.normal(k_x, (T, D), dtype=jnp.float32)
    out = neural_recurrent_regressor_forward(xu, mean, std, w1, b1, w2, logmat)
    out = jax.block_until_ready(out)
    ref = _reference_forward(xu, mean, std, w1, b1, w2, logmat)
    assert out.shape == (T, K, K)
    assert jnp.allclose(out, ref, atol=1e-4, rtol=1e-4), "mismatch vs reference (T=16)"
    assert jnp.allclose(jnp.sum(jnp.exp(out), axis=-1), 1.0, atol=1e-5)

    # --- test 2: T not divisible by pack or tile; multi-step grid; pack=4 ----
    T2 = 301
    xu2 = jax.random.normal(k_x2, (T2, D), dtype=jnp.float32)
    out2 = neural_recurrent_regressor_forward(xu2, mean, std, w1, b1, w2, logmat,
                                              pack=4, tile_t=128)
    out2 = jax.block_until_ready(out2)
    ref2 = _reference_forward(xu2, mean, std, w1, b1, w2, logmat)
    assert out2.shape == (T2, K, K)
    assert jnp.allclose(out2, ref2, atol=1e-4, rtol=1e-4), "mismatch vs reference (T=301)"
    assert jnp.allclose(jnp.sum(jnp.exp(out2), axis=-1), 1.0, atol=1e-5)

    print("KERNEL_OK")
</pallas_src>

<mosaic_0001>
module attributes {stable_mosaic.version = 11 : i64} {
  func.func @_nrr_kernel(%arg0: i32, %arg1: memref<8x16xf32, #tpu.memory_space<vmem>>, %arg2: memref<16x64xf32, #tpu.memory_space<vmem>>, %arg3: memref<1x64xf32, #tpu.memory_space<vmem>>, %arg4: memref<64x144xf32, #tpu.memory_space<vmem>>, %arg5: memref<16x16xf32, #tpu.memory_space<vmem>>, %arg6: memref<1x128xf32, #tpu.memory_space<vmem>>, %arg7: memref<16x128xf32, #tpu.memory_space<vmem>>, %arg8: memref<8x128xf32, #tpu.memory_space<vmem>>) attributes {dimension_semantics = [#tpu.dimension_semantics<parallel>], iteration_bounds = array<i64: 1>, scalar_prefetch = 0 : i64, scratch_operands = 0 : i64, tpu.core_type = #tpu.core_type<tc>, window_params = [{transform_indices = @transform_0, window_bounds = array<i64: 8, 16>}, {pipeline_mode = #tpu.pipeline_mode<synchronous>, transform_indices = @transform_1, window_bounds = array<i64: 16, 64>}, {pipeline_mode = #tpu.pipeline_mode<synchronous>, transform_indices = @transform_2, window_bounds = array<i64: 1, 64>}, {pipeline_mode = #tpu.pipeline_mode<synchronous>, transform_indices = @transform_3, window_bounds = array<i64: 64, 144>}, {pipeline_mode = #tpu.pipeline_mode<synchronous>, transform_indices = @transform_4, window_bounds = array<i64: 16, 16>}, {pipeline_mode = #tpu.pipeline_mode<synchronous>, transform_indices = @transform_5, window_bounds = array<i64: 1, 128>}, {pipeline_mode = #tpu.pipeline_mode<synchronous>, transform_indices = @transform_6, window_bounds = array<i64: 16, 128>}, {transform_indices = @transform_7, window_bounds = array<i64: 8, 128>}]} {
    %c0 = arith.constant 0 : index
    %c0_0 = arith.constant 0 : index
    %0 = vector.load %arg1[%c0, %c0_0] : memref<8x16xf32, #tpu.memory_space<vmem>>, vector<8x16xf32>
    %c0_1 = arith.constant 0 : index
    %c0_2 = arith.constant 0 : index
    %1 = vector.load %arg2[%c0_1, %c0_2] : memref<16x64xf32, #tpu.memory_space<vmem>>, vector<16x64xf32>
    %cst = arith.constant dense<0.000000e+00> : vector<8x64xf32>
    %2 = tpu.matmul %0, %1, %cst {dimension_numbers = #tpu.dot_dimension_numbers<[1], [0], [0], [1], [0, 0, 1, 1], [], []>} : vector<8x16xf32>, vector<16x64xf32>, vector<8x64xf32> -> vector<8x64xf32>
    %c0_3 = arith.constant 0 : index
    %c0_4 = arith.constant 0 : index
    %3 = vector.load %arg3[%c0_3, %c0_4] : memref<1x64xf32, #tpu.memory_space<vmem>>, vector<1x64xf32>
    %4 = vector.broadcast %3 : vector<1x64xf32> to vector<8x64xf32>
    %5 = arith.addf %2, %4 : vector<8x64xf32>
    %cst_5 = arith.constant 0.000000e+00 : f32
    %6 = vector.broadcast %cst_5 : f32 to vector<8x64xf32>
    %7 = arith.maximumf %5, %6 : vector<8x64xf32>
    %c0_6 = arith.constant 0 : index
    %c0_7 = arith.constant 0 : index
    %8 = vector.load %arg4[%c0_6, %c0_7] : memref<64x144xf32, #tpu.memory_space<vmem>>, vector<64x144xf32>
    %cst_8 = arith.constant dense<0.000000e+00> : vector<8x144xf32>
    %9 = tpu.matmul %7, %8, %cst_8 {dimension_numbers = #tpu.dot_dimension_numbers<[1], [0], [0], [1], [0, 0, 1, 1], [], []>} : vector<8x64xf32>, vector<64x144xf32>, vector<8x144xf32> -> vector<8x144xf32>
    %10 = vector.extract_strided_slice %9 {offsets = [0, 0], sizes = [8, 128], strides = [1, 1]} : vector<8x144xf32> to vector<8x128xf32>
    %11 = vector.extract_strided_slice %9 {offsets = [0, 128], sizes = [8, 16], strides = [1, 1]} : vector<8x144xf32> to vector<8x16xf32>
    %cst_9 = arith.constant dense<0xFF800000> : vector<8xf32>
    %12 = vector.multi_reduction <maximumf>, %11, %cst_9 [1] : vector<8x16xf32> to vector<8xf32>
    %13 = vector.shape_cast %12 : vector<8xf32> to vector<8x1xf32>
    %14 = vector.broadcast %13 : vector<8x1xf32> to vector<8x16xf32>
    %15 = arith.subf %11, %14 : vector<8x16xf32>
    %16 = math.exp %15 : vector<8x16xf32>
    %c0_10 = arith.constant 0 : index
    %c0_11 = arith.constant 0 : index
    %17 = vector.load %arg5[%c0_10, %c0_11] : memref<16x16xf32, #tpu.memory_space<vmem>>, vector<16x16xf32>
    %cst_12 = arith.constant dense<0.000000e+00> : vector<8x16xf32>
    %18 = tpu.matmul %16, %17, %cst_12 {dimension_numbers = #tpu.dot_dimension_numbers<[1], [0], [0], [1], [0, 0, 1, 1], [], []>} : vector<8x16xf32>, vector<16x16xf32>, vector<8x16xf32> -> vector<8x16xf32>
    %19 = math.log %18 : vector<8x16xf32>
    %c0_13 = arith.constant 0 : index
    %c0_14 = arith.constant 0 : index
    %20 = vector.load %arg6[%c0_13, %c0_14] : memref<1x128xf32, #tpu.memory_space<vmem>>, vector<1x128xf32>
    %21 = vector.broadcast %13 : vector<8x1xf32> to vector<8x128xf32>
    %22 = arith.subf %10, %21 : vector<8x128xf32>
    %23 = vector.broadcast %20 : vector<1x128xf32> to vector<8x128xf32>
    %24 = arith.addf %23, %22 : vector<8x128xf32>
    %c0_15 = arith.constant 0 : index
    %c0_16 = arith.constant 0 : index
    %25 = vector.load %arg7[%c0_15, %c0_16] : memref<16x128xf32, #tpu.memory_space<vmem>>, vector<16x128xf32>
    %cst_17 = arith.constant dense<0.000000e+00> : vector<8x128xf32>
    %26 = tpu.matmul %19, %25, %cst_17 {dimension_numbers = #tpu.dot_dimension_numbers<[1], [0], [0], [1], [0, 0, 1, 1], [], []>} : vector<8x16xf32>, vector<16x128xf32>, vector<8x128xf32> -> vector<8x128xf32>
    %27 = arith.subf %24, %26 : vector<8x128xf32>
    %c0_18 = arith.constant 0 : index
    %c0_19 = arith.constant 0 : index
    %28 = vector.load %arg8[%c0_18, %c0_19] : memref<8x128xf32, #tpu.memory_space<vmem>>, vector<8x128xf32>
    tpu.vector_store %arg8[%c0_18, %c0_19], %27 {strides = array<i32>} : memref<8x128xf32, #tpu.memory_space<vmem>>, vector<8x128xf32>,
    return
  }
  func.func @transform_0(%arg0: i32) -> (i32, i32) {
    %c0_i32 = arith.constant 0 : i32
    %c0_i32_0 = arith.constant 0 : i32
    return %arg0, %c0_i32 : i32, i32
  }
  func.func @transform_1(%arg0: i32) -> (i32, i32) {
    %c0_i32 = arith.constant 0 : i32
    %c0_i32_0 = arith.constant 0 : i32
    %c0_i32_1 = arith.constant 0 : i32
    return %c0_i32, %c0_i32_0 : i32, i32
  }
  func.func @transform_2(%arg0: i32) -> (i32, i32) {
    %c0_i32 = arith.constant 0 : i32
    %c0_i32_0 = arith.constant 0 : i32
    %c0_i32_1 = arith.constant 0 : i32
    return %c0_i32, %c0_i32_0 : i32, i32
  }
  func.func @transform_3(%arg0: i32) -> (i32, i32) {
    %c0_i32 = arith.constant 0 : i32
    %c0_i32_0 = arith.constant 0 : i32
    %c0_i32_1 = arith.constant 0 : i32
    return %c0_i32, %c0_i32_0 : i32, i32
  }
  func.func @transform_4(%arg0: i32) -> (i32, i32) {
    %c0_i32 = arith.constant 0 : i32
    %c0_i32_0 = arith.constant 0 : i32
    %c0_i32_1 = arith.constant 0 : i32
    return %c0_i32, %c0_i32_0 : i32, i32
  }
  func.func @transform_5(%arg0: i32) -> (i32, i32) {
    %c0_i32 = arith.constant 0 : i32
    %c0_i32_0 = arith.constant 0 : i32
    %c0_i32_1 = arith.constant 0 : i32
    return %c0_i32, %c0_i32_0 : i32, i32
  }
  func.func @transform_6(%arg0: i32) -> (i32, i32) {
    %c0_i32 = arith.constant 0 : i32
    %c0_i32_0 = arith.constant 0 : i32
    %c0_i32_1 = arith.constant 0 : i32
    return %c0_i32, %c0_i32_0 : i32, i32
  }
  func.func @transform_7(%arg0: i32) -> (i32, i32) {
    %c0_i32 = arith.constant 0 : i32
    %c0_i32_0 = arith.constant 0 : i32
    return %arg0, %c0_i32 : i32, i32
  }
}

</mosaic_0001>

<bundles_post_ra>
// kernel: tpu_custom_call.1
= control target key start
LH: loop header
LB: loop body
LE: loop exit
PB: predicated region body
PF: predicated region fallthrough
CT: control target
= control target key end

     0   :  { %12 = vsyncpa [#allocation3], 0  ;;  %s737_s0 = inlined_call_operand.hbm [shape: f32[8,16], index: 0, kind: input, shape index: {}]   ;;  %s738_s1 = inlined_call_operand.hbm [shape: f32[16,64], index: 1, kind: input, shape index: {}]   ;;  %s739_s2 = inlined_call_operand.vmem [shape: f32[1,64], index: 2, kind: input, shape index: {}]   ;;  %s740_s3 = inlined_call_operand.hbm [shape: f32[64,144], index: 3, kind: input, shape index: {}]   ;;  %s741_s4 = inlined_call_operand.hbm [shape: f32[16,16], index: 4, kind: input, shape index: {}]   ;;  %s742_s5 = inlined_call_operand.vmem [shape: f32[1,128], index: 5, kind: input, shape index: {}]   ;;  %s743_s6 = inlined_call_operand.hbm [shape: f32[16,128], index: 6, kind: input, shape index: {}]   ;;  %s744_s7 = inlined_call_operand.hbm [shape: f32[8,128], index: 7, kind: output, shape index: {}]  }
   0x1   :  { %13 = vsyncpa [#allocation6], 0 }
   0x2   :  { %14 = vsyncpa [#allocation9], 0 }
   0x3   :  { %15 = vsyncpa [#allocation4], 0  ;;  %s635_s24 = smov [#allocation5]  }
   0x4   :  { %s31_s25 = sshll.u32 %s635_s24, 4  ;;  %s32_s25 = int_to_ptr.vmem [resolvable:$true] %s31_s25 }
   0x5   :  { %s515_s26 = scalar_lea.vmem %s32_s25, 256  ;;  %p520_p1 = scmp.lt.s32.totalorder %s32_s25, %s32_s25 }
   0x6   :  { %p516_p0 = scmp.ne.s32.totalorder %s32_s25, %s515_s26  ;;  %p521_p2 = scmp.lt.s32.totalorder %s515_s26, %s515_s26 }
   0x8   :  { %p522_p3 = por %p521_p2, %p520_p1 }
   0xa   :  { %p523_p4 = pnand %p522_p3, %p516_p0 }
   0xc   :  { %526 = shalt.err (!%p523_p4)
}
   0xd   :  { %s636_s27 = smov 128   ;;  %s637_s28 = smov 8  }
   0xe   :  { %37 = dma.hbm_to_vmem [thread:$0]  %s738_s1, 256, %s32_s25, [#allocation6], %s636_s27, %s636_s27, %s637_s28  }
   0xf   :  { %s638_s8 = smov [#allocation8]   ;;  %s639_s10 = smov [#allocation2]  }
  0x10   :  { %s57_s9 = sshll.u32 %s638_s8, 4  ;;  %s22_s11 = sshll.u32 %s639_s10, 4  ;;  %s58_s9 = int_to_ptr.vmem [resolvable:$true] %s57_s9  ;;  %s23_s11 = int_to_ptr.vmem [resolvable:$true] %s22_s11 }
  0x11   :  { %s535_s12 = scalar_lea.vmem %s58_s9, 256  ;;  %p540_p6 = scmp.lt.s32.totalorder %s58_s9, %s58_s9 }
  0x12   :  { %p536_p5 = scmp.ne.s32.totalorder %s58_s9, %s535_s12  ;;  %p541_p7 = scmp.lt.s32.totalorder %s535_s12, %s535_s12 }
  0x14   :  { %p542_p8 = por %p541_p7, %p540_p6 }
  0x16   :  { %p543_p9 = pnand %p542_p8, %p536_p5 }
  0x18   :  { %546 = shalt.err (!%p543_p9)
}
  0x19   :  { %63 = dma.hbm_to_vmem [thread:$0]  %s741_s4, 256, %s58_s9, [#allocation9], %s636_s27, %s636_s27, %s637_s28  }
  0x1a   :  { %s555_s1 = scalar_lea.vmem %s23_s11, 128  ;;  %p560_p11 = scmp.lt.s32.totalorder %s23_s11, %s23_s11 }
  0x1b   :  { %p556_p10 = scmp.ne.s32.totalorder %s23_s11, %s555_s1  ;;  %p561_p12 = scmp.lt.s32.totalorder %s555_s1, %s555_s1 }
  0x1d   :  { %p562_p13 = por %p561_p12, %p560_p11 }
  0x1f   :  { %p563_p0 = pnand %p562_p13, %p556_p10 }
  0x21   :  { %566 = shalt.err (!%p563_p0)
}
  0x22   :  { %25 = dma.hbm_to_vmem [thread:$0]  %s737_s0, 128, %s23_s11, [#allocation3]  }
  0x23   :  { %s640_s17 = smov [#allocation7]  }
  0x24   :  { %s45_s18 = sshll.u32 %s640_s17, 4  ;;  %s46_s18 = int_to_ptr.vmem [resolvable:$true] %s45_s18 }
  0x25   :  { %s575_s19 = scalar_lea.vmem %s46_s18, 2048  ;;  %p580_p2 = scmp.lt.s32.totalorder %s46_s18, %s46_s18 }
  0x26   :  { %p576_p1 = scmp.ne.s32.totalorder %s46_s18, %s575_s19  ;;  %p581_p3 = scmp.lt.s32.totalorder %s575_s19, %s575_s19 }
  0x28   :  { %p582_p4 = por %p581_p3, %p580_p2 }
  0x2a   :  { %p583_p5 = pnand %p582_p4, %p576_p1 }
  0x2c   :  { %586 = shalt.err (!%p583_p5)
}
  0x2d   :  { %s641_s4 = smov 256   ;;  %s642_s20 = smov 16  }
  0x2e   :  { %51 = dma.hbm_to_vmem [thread:$0]  %s740_s3, 2048, %s46_s18, [#allocation6], %s641_s4, %s641_s4, %s642_s20  }
  0x2f   :  { %s643_s23 = smov [#allocation10]  }
  0x30   :  { %s71_s24 = sshll.u32 %s643_s23, 4  ;;  %s72_s24 = int_to_ptr.vmem [resolvable:$true] %s71_s24 }
  0x31   :  { %s595_s0 = scalar_lea.vmem %s72_s24, 256  ;;  %p600_p7 = scmp.lt.s32.totalorder %s72_s24, %s72_s24 }
  0x32   :  { %p596_p6 = scmp.ne.s32.totalorder %s72_s24, %s595_s0  ;;  %p601_p8 = scmp.lt.s32.totalorder %s595_s0, %s595_s0 }
  0x34   :  { %p602_p9 = por %p601_p8, %p600_p7 }
  0x36   :  { %p603_p10 = pnand %p602_p9, %p596_p6 }
  0x38   :  { %606 = shalt.err (!%p603_p10)
}
  0x39   :  { %77 = dma.hbm_to_vmem [thread:$0]  %s743_s6, 256, %s72_s24, [#allocation9], %s636_s27, %s636_s27, %s637_s28  }
  0x3a   :  { %627 = dma.done.wait [#allocation3], 128  }
  0x3b   :  { %628 = vsyncadd [#allocation3], 4294967168 }
  0x3c   :  { %629 = dma.done.wait [#allocation6], 2304  }
  0x3d   :  { %630 = vsyncadd [#allocation6], 4294964992 }
  0x3e   :  { %631 = dma.done.wait [#allocation9], 512  }
  0x3f   :  { %632 = vsyncadd [#allocation9], 4294966784  ;;  %v644_v0 = vmov 0.0   ;;  %vm645_vm0 = vmmov 0   ;;  %v95_v1 = vld [vmem:[#allocation5 + $0x8] sm:$0xff]  ;;  %v94_v2 = vld [vmem:[#allocation5] sm:$0xff] }
  0x40   :  { %470 = vmatprep.subr.mxu0 %v644_v0  ;;  %474 = vmatprep.mubr.msk.f32.mxu0 %vm645_vm0, %v644_v0  ;;  %v93_v3 = vld [vmem:[#allocation2] sm:$0xff]  ;;  %vm103_vm1 = vcmask 130048   ;;  %v193_v4 = vld [vmem:[#allocation7 + $0x78] sm:$0xff]  ;;  %v192_v5 = vld [vmem:[#allocation7 + $0x70] sm:$0xff]  ;;  %vm194_vm2 = vcmask 523264   ;;  %s646_s28 = smov [#allocation11]  }
  0x41   :  { %262 = vmatprep.mubr.f32.mxu1 %v644_v0  ;;  %471 = vmatpush3.msra.mxu0 %v95_v1  ;;  %v191_v6 = vld [vmem:[#allocation7 + $0x68] sm:$0xff]  ;;  %v190_v7 = vld [vmem:[#allocation7 + $0x60] sm:$0xff]  ;;  %v189_v8 = vld [vmem:[#allocation7 + $0x58] sm:$0xff]  ;;  %s444_s29 = sshll.u32 %s646_s28, 4  ;;  %s445_s29 = int_to_ptr.vmem [resolvable:$true] %s444_s29 }
  0x42   :  { %472 = vmatprep.subr.mxu0 %v644_v0  ;;  %214 = vmatprep.subr.mxu1 %v193_v4  ;;  %v188_v9 = vld [vmem:[#allocation7 + $0x50] sm:$0xff]  ;;  %v187_v10 = vld [vmem:[#allocation7 + $0x48] sm:$0xff]  ;;  %v186_v11 = vld [vmem:[#allocation7 + $0x40] sm:$0xff]  ;;  %s607_s30 = scalar_lea.vmem %s445_s29, 128  ;;  %p612_p12 = scmp.lt.s32.totalorder %s445_s29, %s445_s29 }
  0x43   :  { %473 = vmatpush3.msra.mxu0 %v94_v2  ;;  %215 = vmatpush1.msra.mxu1 %v192_v5  ;;  %v185_v12 = vld [vmem:[#allocation7 + $0x38] sm:$0xff]  ;;  %v184_v13 = vld [vmem:[#allocation7 + $0x30] sm:$0xff]  ;;  %v183_v14 = vld [vmem:[#allocation7 + $0x28] sm:$0xff]  ;;  %p608_p11 = scmp.ne.s32.totalorder %s445_s29, %s607_s30  ;;  %p613_p13 = scmp.lt.s32.totalorder %s607_s30, %s607_s30 }
  0x44   :  { %475 = vmatmul.mubr.msk.f32.vlgmr.msra.gmra.mxu0 %vm103_vm1, %v93_v3  ;;  %216 = vmatprep.subr.mxu1 %v191_v6  ;;  %v182_v15 = vld [vmem:[#allocation7 + $0x20] sm:$0xff]  ;;  %v181_v16 = vld [vmem:[#allocation7 + $0x18] sm:$0xff]  ;;  %v180_v17 = vld [vmem:[#allocation7 + $0x10] sm:$0xff] }
  0x45   :  { %217 = vmatpush1.msra.mxu1 %v190_v7  ;;  %477 = vmatprep.subr.mxu0 %v644_v0  ;;  %v179_v18 = vld [vmem:[#allocation7 + $0x8] sm:$0xff]  ;;  %v178_v19 = vld [vmem:[#allocation7] sm:$0xff]  ;;  %v362_v34 = vld [vmem:[#allocation10 + $0x8] sm:$0xff]  ;;  %p614_p0 = por %p613_p13, %p612_p12 }
  0x46   :  { %218 = vmatprep.subr.mxu1 %v189_v8  ;;  %481 = vmatprep.mubr.msk.f32.mxu0 %vm645_vm0, %v644_v0  ;;  %v455_v20 = vld [vmem:[%s739_s2] ss:$0 sm:$0xff]  ;;  %v275_v29 = vld [vmem:[#allocation8] sm:$0xff]  ;;  %v361_v35 = vld [vmem:[#allocation10] sm:$0xff] }
  0x47   :  { %219 = vmatpush1.msra.mxu1 %v188_v9  ;;  %v276_v28 = vld [vmem:[#allocation8 + $0x8] sm:$0xff]  ;;  %p615_p1 = pnand %p614_p0, %p608_p11 }
  0x48   :  { %220 = vmatprep.subr.mxu1 %v187_v10  ;;  %478 = vmatpush3.msra.mxu0 %v276_v28  ;;  %v459_v41 = vld [vmem:[%s742_s5] ss:$0 sm:$0xff] }
  0x49   :  { %221 = vmatpush1.msra.mxu1 %v186_v11  ;;  %479 = vmatprep.subr.mxu0 %v644_v0 }
  0x4a   :  { %222 = vmatprep.subr.mxu1 %v185_v12  ;;  %480 = vmatpush3.msra.mxu0 %v275_v29 }
  0x4b   :  { %223 = vmatpush1.msra.mxu1 %v184_v13  ;;  %484 = vmatprep.subr.mxu0 %v644_v0 }
  0x4c   :  { %224 = vmatprep.subr.mxu1 %v183_v14 }
  0x4d   :  { %225 = vmatpush1.msra.mxu1 %v182_v15 }
  0x4e   :  { %226 = vmatprep.subr.mxu1 %v181_v16 }
  0x4f   :  { %227 = vmatpush1.msra.mxu1 %v180_v17 }
  0x50   :  { %228 = vmatprep.subr.mxu1 %v179_v18 }
  0x51   :  { %229 = vmatpush1.msra.mxu1 %v178_v19 }
 0x104   :  { %v173_v21 = vpop.f32.mrf.mxu0 }
 0x105   :  { %v174_v22 = vadd.f32 %v455_v20, %v173_v21 }
 0x106   :  { %v476_v23 = vpop.f32.mrf.mxu0 }
 0x107   :  { %v177_v24 = vmax.f32 %v174_v22, 0.0 }
 0x109   :  { %457 = vmatmul.mubr.msk.f32.vlgmr.msra.gmra.mxu1 %vm194_vm2, %v177_v24 }
 0x1c9   :  { %v264_v25 = vpop.f32.mrf.mxu1 }
 0x1cb   :  { %v266_v26 = vpop.f32.mrf.mxu1 }
 0x1cc   :  { %v269_v27 = vsel %vm103_vm1, %v266_v26, -inf }
 0x1cd   :  { %270 = vmax.xlane.f32.xlu0 %v269_v27 }
 0x256   :  { %v271_v30 = vpop.xlane.xlu0 %270 }
 0x257   :  { %v272_v31 = vsub.f32 %v266_v26, %v271_v30  ;;  %v353_v40 = vsub.f32 %v264_v25, %v271_v30 }
 0x259   :  { %v273_v32 = vmul.f32 1.442695, %v272_v31  ;;  %v360_v42 = vadd.f32 %v459_v41, %v353_v40 }
 0x25b   :  { %503 = vpow2.f32 %v273_v32 }
 0x268   :  { %v504_v33 = vpop.eup %503 }
 0x269   :  { %482 = vmatmul.mubr.msk.f32.vlgmr.msra.gmra.mxu0 %vm103_vm1, %v504_v33 }
 0x26a   :  { %488 = vmatprep.mubr.msk.f32.mxu0 %vm645_vm0, %v644_v0  ;;  %485 = vmatpush3.msra.mxu0 %v362_v34 }
 0x26b   :  { %486 = vmatprep.subr.mxu0 %v644_v0 }
 0x26c   :  { %487 = vmatpush3.msra.mxu0 %v361_v35 }
 0x329   :  { %v346_v36 = vpop.f32.mrf.mxu0 }
 0x32a   :  { %505 = vlog2.f32 %v346_v36 }
 0x32b   :  { %v483_v37 = vpop.f32.mrf.mxu0 }
 0x337   :  { %v506_v38 = vpop.eup %505 }
 0x338   :  { %v351_v39 = vmul.f32 0.6931472, %v506_v38 }
 0x33a   :  { %489 = vmatmul.mubr.msk.f32.vlgmr.msra.gmra.mxu0 %vm103_vm1, %v351_v39 }
 0x3fa   :  { %v432_v43 = vpop.f32.mrf.mxu0 }
 0x3fb   :  { %v436_v44 = vsub.f32 %v360_v42, %v432_v43 }
 0x3fc   :  { %v490_v45 = vpop.f32.mrf.mxu0 }
 0x3fd   :  { %437 = vst [vmem:[#allocation11] sm:$0xff] %v436_v44 }
 0x3fe   :  { %618 = shalt.err (!%p615_p1)
}
 0x3ff   :  { %447 = dma.vmem_to_hbm [thread:$0]  %s445_s29, 128, %s744_s7, [#allocation4]  }
 0x400   :  { %633 = dma.done.wait [#allocation4], 128  }
 0x401   :  { %634 = vsyncadd [#allocation4], 4294967168 }
 0x402   :  { %451 = vsyncpa [#allocation3], 1 }
 0x403   :  { %452 = vsyncpa [#allocation6], 1 }
 0x404   :  { %453 = vsyncpa [#allocation9], 1 }
 0x405   :  { %454 = vsyncpa [#allocation4], 1 }

</bundles_post_ra>
